<compile_context>
chip_gen: v7x
topology: tpu7x:2x2x1
jax: 0.10.0
libtpu: 0.0.40
codegen_flags: <defaults>
</compile_context>

<pallas_src>
import functools
import math

import jax
import jax.numpy as jnp
from jax import lax
from jax.experimental import pallas as pl
from jax.experimental.pallas import tpu as pltpu


# ---------------------------------------------------------------------------
# Small helpers
# ---------------------------------------------------------------------------

def _pick_tile(dim, candidates):
    """Largest candidate that evenly divides `dim`, else the full dimension."""
    for c in candidates:
        if dim % c == 0:
            return c
    return dim


@functools.lru_cache(maxsize=None)
def _vmem_limit_bytes():
    # Raise the scoped VMEM limit toward the physical capacity of the chip we
    # are running on (the 32 MiB default is far below v5e/v6e's 128 MiB).
    try:
        cap = pltpu.get_tpu_info().vmem_capacity_bytes
        return int(cap * 3 // 4)
    except Exception:  # pragma: no cover - conservative fallback
        return None


# ---------------------------------------------------------------------------
# Tiled linear projection kernel:  y = x @ w_t + b   (w_t already (K, N), bf16)
# ---------------------------------------------------------------------------

def _linear_kernel(x_ref, w_ref, b_ref, o_ref, acc_ref):
    @pl.when(pl.program_id(2) == 0)
    def _zero():
        acc_ref[...] = jnp.zeros_like(acc_ref)

    # bf16 MXU matmul with f32 accumulation; x is cast in-kernel so the HBM
    # read of the activations stays a single f32 pass (no extra cast pass).
    acc_ref[...] += jnp.dot(x_ref[...].astype(jnp.bfloat16), w_ref[...],
                            preferred_element_type=jnp.float32)

    @pl.when(pl.program_id(2) == pl.num_programs(2) - 1)
    def _store():
        o_ref[...] = (acc_ref[...] + b_ref[...]).astype(o_ref.dtype)


def linear_pallas(x, w_t, b, out_dtype=jnp.bfloat16):
    """x: (M, K) f32, w_t: (K, N) bf16 (pre-transposed), b: (N,) -> (M, N)."""
    m, k = x.shape
    n = w_t.shape[1]
    tm = _pick_tile(m, (512, 256, 128, 64, 32, 16, 8))
    tn = _pick_tile(n, (512, 256, 128))
    tk = _pick_tile(k, (1024, 512, 256, 128))
    b2 = b.reshape(1, n).astype(jnp.float32)
    return pl.pallas_call(
        _linear_kernel,
        out_shape=jax.ShapeDtypeStruct((m, n), out_dtype),
        grid=(m // tm, n // tn, k // tk),
        in_specs=[
            pl.BlockSpec((tm, tk), lambda i, j, kk: (i, kk)),
            pl.BlockSpec((tk, tn), lambda i, j, kk: (kk, j)),
            pl.BlockSpec((1, tn), lambda i, j, kk: (0, j)),
        ],
        out_specs=pl.BlockSpec((tm, tn), lambda i, j, kk: (i, j)),
        scratch_shapes=[pltpu.VMEM((tm, tn), jnp.float32)],
        compiler_params=pltpu.CompilerParams(
            dimension_semantics=("parallel", "parallel", "arbitrary"),
            vmem_limit_bytes=_vmem_limit_bytes()),
    )(x, w_t, b2)


# ---------------------------------------------------------------------------
# Monotonic attention core kernel (energies + lattice DP + output + out-proj)
# ---------------------------------------------------------------------------

def _mono_attn_kernel(q_ref, k_ref, v_ref, wo_ref, ob_ref, o_ref,
                      pphi, phi_prev, p_prev,
                      *, H, Hkv, G, D, TQ, Hp, RB):
    qi = pl.program_id(1)
    Tk = k_ref.shape[1]

    # --- (re)initialise the DP carries at the start of each batch's qi sweep.
    # With phi_prev = p_prev = e0 (one at column 0), the incoming mass
    # a = p_prev * phi_prev equals e0 for the first query row, folding the
    # first-row special case into the carry initialisation.
    # NOTE: correctness relies on the qi grid axis staying "arbitrary" and
    # innermost (the carries persist across qi steps within one batch).
    @pl.when(qi == 0)
    def _init():
        col0 = lax.broadcasted_iota(jnp.int32, (Hp, Tk), 1) == 0
        e0 = jnp.where(col0, 1.0, 0.0).astype(jnp.float32)
        phi_prev[...] = e0
        p_prev[...] = e0

    # --- energies + sigmoid, GQA-grouped: one (G*TQ, D) x (Tk, D)^T MXU dot
    # per kv head (fewer RHS pushes, larger M fill).  Internal head order in
    # the scratch is h' = hkv*G + g; the output phase maps it back to the
    # external head h = g*Hkv + hkv.
    for hkv in range(Hkv):
        k_h = k_ref[0, :, hkv * D:(hkv + 1) * D]                    # (Tk, D) bf16
        if G == 1:
            q_s = q_ref[0, :, hkv * D:(hkv + 1) * D]                # (TQ, D)
        else:
            q_s = jnp.concatenate(
                [q_ref[0, :, (g * Hkv + hkv) * D:(g * Hkv + hkv + 1) * D]
                 for g in range(G)], axis=0)                        # (G*TQ, D)
        s = lax.dot_general(q_s, k_h, (((1,), (1,)), ((), ())),
                            preferred_element_type=jnp.float32)     # (G*TQ, Tk)
        p = pl.reciprocal(1.0 + jnp.exp(-s), approx=True)           # sigmoid
        pphi[hkv * G * TQ:(hkv * G + G) * TQ, :] = p                # contiguous

    # --- constants for the in-row affine scan (hoisted out of all loops).
    # The scan is blocked into 128-lane chunks so lane rotations stay inside a
    # single vreg column; chunk composites are composed with a short serial pass.
    NC = Tk // 128 if (Tk % 128 == 0 and Tk > 128) else 1
    C = Tk // NC
    ge1 = lax.broadcasted_iota(jnp.int32, (Hp, Tk), 1) >= 1
    steps = []
    st = 1
    while st < C:
        steps.append(st)
        st *= 2
    lane_c = lax.broadcasted_iota(jnp.int32, (Hp, C), 1)
    masks = [lane_c >= s for s in steps]

    nblk = TQ // RB

    # --- sequential DP over the TQ rows of this tile, in blocks of RB rows.
    # Per block: contiguous per-head p reads, RB statically-unrolled rows of
    # the affine Hillis-Steele scan on a full (Hp, Tk) sublane-padded working
    # set, then contiguous per-head phi writes back into the SAME scratch
    # (aliasing is safe: the block's p was fully read before it is overwritten
    # and the current row's p is carried in registers).
    def block_body(blk, carry):
        phi_pv, p_pv = carry
        base = pl.multiple_of(blk * RB, RB)
        p_blks = [pphi[pl.ds(h * TQ + base, RB), :] for h in range(H)]
        phi_rows = []
        for r in range(RB):
            parts = [p_blks[h][r:r + 1, :] for h in range(H)]
            if Hp > H:                      # pad to full 8-sublane working set
                parts = parts + [parts[0]] * (Hp - H)
            p_row = jnp.concatenate(parts, axis=0)                  # (Hp, Tk)

            a = phi_pv * p_pv               # mass entering from the row above
            cf = jnp.where(ge1, pltpu.roll(1.0 - p_row, 1, axis=1), 0.0)

            x = jnp.zeros((Hp, 1), jnp.float32)
            outs = []
            for m in range(NC):
                c = cf[:, m * C:(m + 1) * C]
                d = a[:, m * C:(m + 1) * C]
                for mk, stp in zip(masks, steps):
                    c_sh = jnp.where(mk, pltpu.roll(c, stp, axis=1), 1.0)
                    d_sh = jnp.where(mk, pltpu.roll(d, stp, axis=1), 0.0)
                    d = c * d_sh + d
                    c = c * c_sh
                ph = d if m == 0 else d + c * x
                outs.append(ph)
                if m + 1 < NC:
                    x = ph[:, C - 1:C]
            phi_row = outs[0] if NC == 1 else jnp.concatenate(outs, axis=1)

            phi_rows.append(phi_row)
            phi_pv, p_pv = phi_row, p_row

        for h in range(H):
            if RB > 1:
                blk_phi = jnp.concatenate(
                    [phi_rows[r][h:h + 1, :] for r in range(RB)], axis=0)
            else:
                blk_phi = phi_rows[0][h:h + 1, :]
            pphi[pl.ds(h * TQ + base, RB), :] = blk_phi
        return (phi_pv, p_pv)

    phi_last, p_last = lax.fori_loop(
        0, nblk, block_body, (phi_prev[...], p_prev[...]))
    phi_prev[...] = phi_last
    p_prev[...] = p_last

    # --- per-head outputs (contiguous phi slabs feed the MXU), assembled into
    # a single lane-dense (TQ, E) tile, followed by the fused output projection
    # against the VMEM-resident W_out^T; one full-width store per grid step.
    head_outs = []
    for hq in range(H):
        g, hkv = divmod(hq, Hkv)
        hi = hkv * G + g
        v_h = v_ref[0, :, hkv * D:(hkv + 1) * D]                    # (Tk, D) bf16
        phi_h = pphi[hi * TQ:(hi + 1) * TQ, :].astype(jnp.bfloat16)  # (TQ, Tk)
        head_outs.append(jnp.dot(phi_h, v_h,
                                 preferred_element_type=jnp.float32))
    xo = jnp.concatenate(head_outs, axis=1) if H > 1 else head_outs[0]
    proj = jnp.dot(xo.astype(jnp.bfloat16), wo_ref[...],
                   preferred_element_type=jnp.float32)
    o_ref[0, :, :] = (proj + ob_ref[...]).astype(o_ref.dtype)


def mono_attention_core(xq, xk, xv, wo_t, out_bias, *, num_heads, kv_num_heads):
    """xq: (B, Tq, E) bf16; xk/xv: (B, Tk, kvE) bf16; wo_t: (E, E) bf16.

    Returns the fully projected output, (B, Tq, E) f32.
    """
    B, Tq, E = xq.shape
    Tk, kvE = xk.shape[1], xk.shape[2]
    H, Hkv = num_heads, kv_num_heads
    G = H // Hkv
    D = E // H

    # Cap TQ at 128 for the v7x 64 MiB VMEM budget.
    TQ = _pick_tile(Tq, (128, 64, 32, 16, 8))
    Hp = max(8, ((H + 7) // 8) * 8)          # sublane-padded row working set
    RB = 8 if TQ % 8 == 0 else 1             # DP row-block size

    kernel = functools.partial(_mono_attn_kernel, H=H, Hkv=Hkv, G=G, D=D,
                               TQ=TQ, Hp=Hp, RB=RB)
    ob2 = out_bias.reshape(1, E).astype(jnp.float32)

    # TODO(synk): for v7x with B < num cores, add a leading "parallel" grid
    #             axis over head groups (independent DP carries per core).
    # TODO(synk): for v7x, pl.Buffered(1) on the K/V specs would drop the
    #             second (prefetch-only-across-batches) K/V buffer.
    return pl.pallas_call(
        kernel,
        out_shape=jax.ShapeDtypeStruct((B, Tq, E), jnp.float32),
        grid=(B, Tq // TQ),
        in_specs=[
            pl.BlockSpec((1, TQ, E), lambda b, qi: (b, qi, 0)),     # q
            pl.BlockSpec((1, Tk, kvE), lambda b, qi: (b, 0, 0)),    # k (resident)
            pl.BlockSpec((1, Tk, kvE), lambda b, qi: (b, 0, 0)),    # v (resident)
            pl.BlockSpec((E, E), lambda b, qi: (0, 0)),             # W_out^T
            pl.BlockSpec((1, E), lambda b, qi: (0, 0)),             # out bias
        ],
        out_specs=pl.BlockSpec((1, TQ, E), lambda b, qi: (b, qi, 0)),
        scratch_shapes=[
            pltpu.VMEM((H * TQ, Tk), jnp.float32),   # aliased p/phi, head-major
            pltpu.VMEM((Hp, Tk), jnp.float32),       # phi[i-1, :] carry
            pltpu.VMEM((Hp, Tk), jnp.float32),       # p[i-1, :]   carry
        ],
        # qi MUST stay "arbitrary": it carries the DP state across tiles.
        compiler_params=pltpu.CompilerParams(
            dimension_semantics=("parallel", "arbitrary"),
            vmem_limit_bytes=_vmem_limit_bytes()),
    )(xq, xk, xv, wo_t, ob2)


# ---------------------------------------------------------------------------
# Module wrapper (parameter setup / reshapes are plain-JAX glue)
# ---------------------------------------------------------------------------

class ManyToManyMultiheadMonotonicAttention:
    # TODO(synk): separate q/k/v projection weights (kdim/vdim != embed_dim)
    #             path not implemented (only the fused in_proj path).
    # TODO(synk): optional attention `mask` argument not implemented.
    # TODO(synk): `epsilon` / `max_kv_cache_len` / kv-cache streaming are
    #             unused by the reference forward and not implemented.

    def __init__(self, embed_dim, num_heads, bias=True, kdim=None, vdim=None,
                 gqa_factor=1, max_kv_cache_len=None, epsilon=1e-3, *, key):
        assert embed_dim % num_heads == 0
        assert num_heads % gqa_factor == 0
        self.num_heads = num_heads
        self.gqa_factor = gqa_factor
        self.kv_num_heads = num_heads // gqa_factor
        self.head_dim = embed_dim // num_heads
        self.embed_dim = embed_dim
        self.kv_embed_dim = self.kv_num_heads * self.head_dim
        self.kdim = kdim if kdim is not None else embed_dim
        self.vdim = vdim if vdim is not None else embed_dim
        self.epsilon = epsilon
        self.max_kv_cache_len = max_kv_cache_len
        assert self.kdim == embed_dim and self.vdim == embed_dim, \
            "only the fused in_proj (_qkv_same_embed_dim) path is implemented"

        k1, k2 = jax.random.split(key)
        rows = embed_dim + 2 * self.kv_embed_dim
        bound = math.sqrt(6.0 / (rows + embed_dim))            # xavier_uniform_
        self.in_proj_weight = jax.random.uniform(
            k1, (rows, embed_dim), jnp.float32, -bound, bound)
        self.in_proj_bias = jnp.zeros((rows,), jnp.float32) if bias else None
        lim = 1.0 / math.sqrt(embed_dim)                        # nn.Linear default
        self.out_proj_weight = jax.random.uniform(
            k2, (embed_dim, embed_dim), jnp.float32, -lim, lim)
        self.out_proj_bias = jnp.zeros((embed_dim,), jnp.float32) if bias else None

        # Pre-transposed, pre-cast (bf16) weight splits: done once at init so
        # no per-call transpose / cast HBM round trips are needed.
        E, kvE = embed_dim, self.kv_embed_dim
        self._qw_t = jnp.transpose(self.in_proj_weight[:E]).astype(jnp.bfloat16)
        self._kw_t = jnp.transpose(self.in_proj_weight[E:E + kvE]).astype(jnp.bfloat16)
        self._vw_t = jnp.transpose(self.in_proj_weight[E + kvE:]).astype(jnp.bfloat16)
        self._ow_t = jnp.transpose(self.out_proj_weight).astype(jnp.bfloat16)

    def __call__(self, query, key, value):
        # query/key/value: (B, T, C) like the PyTorch module.
        B, Tq, _ = query.shape
        Tk = key.shape[1]
        E, kvE = self.embed_dim, self.kv_embed_dim

        bias = self.in_proj_bias
        if bias is None:
            bias = jnp.zeros((E + 2 * kvE,), jnp.float32)
        qb, kb, vb = bias[:E], bias[E:E + kvE], bias[E + kvE:]
        ob = self.out_proj_bias
        if ob is None:
            ob = jnp.zeros((E,), jnp.float32)

        # Projections (bf16 MXU, f32 accumulation, bf16 outputs feeding the
        # attention kernel).  No head-split transposes in the wrapper: the
        # attention kernel consumes the natural (B, T, H*D) layouts directly.
        xq = linear_pallas(query.reshape(B * Tq, E), self._qw_t, qb).reshape(B, Tq, E)
        xk = linear_pallas(key.reshape(B * Tk, self.kdim), self._kw_t, kb).reshape(B, Tk, kvE)
        xv = linear_pallas(value.reshape(B * Tk, self.vdim), self._vw_t, vb).reshape(B, Tk, kvE)

        # Attention + fused output projection (single HBM write of the result).
        return mono_attention_core(
            xq, xk, xv, self._ow_t, ob,
            num_heads=self.num_heads, kv_num_heads=self.kv_num_heads)


# ---------------------------------------------------------------------------
# Pure-JAX reference (mirrors the PyTorch forward) for validation
# ---------------------------------------------------------------------------

def _monotonic_attention_ref(p):
    """Lattice-path DP phi; p: (..., Tq, Tk) in [0, 1]."""
    batch = p.shape[:-2]
    p_rows = jnp.moveaxis(p, -2, 0)                                   # (Tq, ..., Tk)

    def first_row(p_row):
        def col(carry, pj):
            phi_j = (1.0 - pj) * carry
            return phi_j, phi_j
        init = jnp.ones(batch, p.dtype)
        _, rest = lax.scan(col, init, jnp.moveaxis(p_row[..., :-1], -1, 0))
        return jnp.concatenate([init[..., None], jnp.moveaxis(rest, 0, -1)], axis=-1)

    def next_row(phi_prev, p_prev, p_row):
        a = p_prev * phi_prev
        def col(carry, xs):
            a_j, pj_left = xs
            phi_j = a_j + (1.0 - pj_left) * carry
            return phi_j, phi_j
        init = a[..., 0]
        xs = (jnp.moveaxis(a[..., 1:], -1, 0),
              jnp.moveaxis(p_row[..., :-1], -1, 0))
        _, rest = lax.scan(col, init, xs)
        return jnp.concatenate([init[..., None], jnp.moveaxis(rest, 0, -1)], axis=-1)

    phi0 = first_row(p_rows[0])

    def row_step(carry, p_row):
        phi_prev, p_prev = carry
        phi_row = next_row(phi_prev, p_prev, p_row)
        return (phi_row, p_row), phi_row

    _, phi_rest = lax.scan(row_step, (phi0, p_rows[0]), p_rows[1:])
    phi = jnp.concatenate([phi0[None], phi_rest], axis=0)             # (Tq, ..., Tk)
    return jnp.moveaxis(phi, 0, -2)


def forward_reference(mod, query, key, value):
    hp = jax.lax.Precision.HIGHEST
    E, kvE = mod.embed_dim, mod.kv_embed_dim
    G, Hkv, Dh = mod.gqa_factor, mod.kv_num_heads, mod.head_dim
    B, Tq, _ = query.shape
    Tk = key.shape[1]
    w = mod.in_proj_weight
    b = mod.in_proj_bias
    if b is None:
        b = jnp.zeros((E + 2 * kvE,), jnp.float32)
    qw, kw, vw = w[:E], w[E:E + kvE], w[E + kvE:]
    qb, kb, vb = b[:E], b[E:E + kvE], b[E + kvE:]
    xq = jnp.matmul(query, qw.T, precision=hp) + qb
    xk = jnp.matmul(key, kw.T, precision=hp) + kb
    xv = jnp.matmul(value, vw.T, precision=hp) + vb
    xq = xq.reshape(B, Tq, G, Hkv, Dh).transpose(0, 2, 3, 1, 4)       # (B,G,Hkv,Tq,D)
    xk = xk.reshape(B, Tk, 1, Hkv, Dh).transpose(0, 2, 3, 1, 4)
    xv = xv.reshape(B, Tk, 1, Hkv, Dh).transpose(0, 2, 3, 1, 4)
    xk = jnp.broadcast_to(xk, (B, G, Hkv, Tk, Dh))
    xv = jnp.broadcast_to(xv, (B, G, Hkv, Tk, Dh))
    attn = jnp.einsum('bghqc,bghkc->bghqk', xq, xk, precision=hp)
    phi = _monotonic_attention_ref(jax.nn.sigmoid(attn))
    xo = jnp.einsum('bghqk,bghkc->bghqc', phi, xv, precision=hp)
    xo = xo.transpose(0, 3, 1, 2, 4).reshape(B, Tq, E)
    ob = mod.out_proj_bias
    if ob is None:
        ob = jnp.zeros((E,), jnp.float32)
    return jnp.matmul(xo, mod.out_proj_weight.T, precision=hp) + ob


# ---------------------------------------------------------------------------
# Demo
# ---------------------------------------------------------------------------

if __name__ == "__main__":
    B, Tq, Tk = 2, 128, 128
    embed_dim, num_heads, gqa_factor = 64, 4, 2

    root = jax.random.PRNGKey(0)
    k_params, k_q, k_k, k_v = jax.random.split(root, 4)

    module = ManyToManyMultiheadMonotonicAttention(
        embed_dim, num_heads, bias=True, gqa_factor=gqa_factor, key=k_params)

    query = jax.random.normal(k_q, (B, Tq, embed_dim), jnp.float32)
    key_t = jax.random.normal(k_k, (B, Tk, embed_dim), jnp.float32)
    value = jax.random.normal(k_v, (B, Tk, embed_dim), jnp.float32)

    out = module(query, key_t, value)
    out = jax.block_until_ready(out)
    assert out.shape == (B, Tq, embed_dim)

    ref = jax.block_until_ready(forward_reference(module, query, key_t, value))
    scale = float(jnp.max(jnp.abs(ref)))
    max_err = float(jnp.max(jnp.abs(out - ref)))
    # bf16 MXU matmuls + approx-reciprocal sigmoid vs the f32 HIGHEST reference.
    if max_err > 5e-2 * scale + 1e-2:
        raise AssertionError(
            f"Pallas kernel deviates from reference: max |err| = {max_err}, "
            f"max |ref| = {scale}")

    print("KERNEL_OK")
</pallas_src>

<mosaic_0001>
module attributes {stable_mosaic.version = 11 : i64} {
  func.func @_linear_kernel(%arg0: i32, %arg1: i32, %arg2: i32, %arg3: memref<256x64xf32, #tpu.memory_space<vmem>>, %arg4: memref<64x64xbf16, #tpu.memory_space<vmem>>, %arg5: memref<1x64xf32, #tpu.memory_space<vmem>>, %arg6: memref<256x64xbf16, #tpu.memory_space<vmem>>, %arg7: memref<256x64xf32, #tpu.memory_space<vmem>>) attributes {dimension_semantics = [#tpu.dimension_semantics<parallel>, #tpu.dimension_semantics<parallel>, #tpu.dimension_semantics<arbitrary>], iteration_bounds = array<i64: 1, 1, 1>, scalar_prefetch = 0 : i64, scratch_operands = 1 : i64, tpu.core_type = #tpu.core_type<tc>, window_params = [{transform_indices = @transform_0, window_bounds = array<i64: 256, 64>}, {transform_indices = @transform_1, window_bounds = array<i64: 64, 64>}, {transform_indices = @transform_2, window_bounds = array<i64: 1, 64>}, {transform_indices = @transform_3, window_bounds = array<i64: 256, 64>}]} {
    %c0_i32 = arith.constant 0 : i32
    %0 = arith.cmpi eq, %arg2, %c0_i32 : i32
    %1 = arith.extui %0 : i1 to i32
    %c0_i32_0 = arith.constant 0 : i32
    %2 = arith.cmpi ne, %1, %c0_i32_0 : i32
    scf.if %2 {
      %cst_10 = arith.constant 0.000000e+00 : f32
      %13 = vector.broadcast %cst_10 : f32 to vector<256x64xf32>
      %c0_11 = arith.constant 0 : index
      %c0_12 = arith.constant 0 : index
      %14 = vector.load %arg7[%c0_11, %c0_12] : memref<256x64xf32, #tpu.memory_space<vmem>>, vector<256x64xf32>
      tpu.vector_store %arg7[%c0_11, %c0_12], %13 {strides = array<i32>} : memref<256x64xf32, #tpu.memory_space<vmem>>, vector<256x64xf32>,
    } else {
    }
    %c0 = arith.constant 0 : index
    %c0_1 = arith.constant 0 : index
    %3 = vector.load %arg7[%c0, %c0_1] : memref<256x64xf32, #tpu.memory_space<vmem>>, vector<256x64xf32>
    %c0_2 = arith.constant 0 : index
    %c0_3 = arith.constant 0 : index
    %4 = vector.load %arg3[%c0_2, %c0_3] : memref<256x64xf32, #tpu.memory_space<vmem>>, vector<256x64xf32>
    %5 = arith.truncf %4 : vector<256x64xf32> to vector<256x64xbf16>
    %c0_4 = arith.constant 0 : index
    %c0_5 = arith.constant 0 : index
    %6 = vector.load %arg4[%c0_4, %c0_5] : memref<64x64xbf16, #tpu.memory_space<vmem>>, vector<64x64xbf16>
    %cst = arith.constant dense<0.000000e+00> : vector<256x64xf32>
    %7 = tpu.matmul %5, %6, %cst {dimension_numbers = #tpu.dot_dimension_numbers<[1], [0], [0], [1], [0, 0, 1, 1], [], []>} : vector<256x64xbf16>, vector<64x64xbf16>, vector<256x64xf32> -> vector<256x64xf32>
    %8 = arith.addf %3, %7 : vector<256x64xf32>
    %c0_6 = arith.constant 0 : index
    %c0_7 = arith.constant 0 : index
    %9 = vector.load %arg7[%c0_6, %c0_7] : memref<256x64xf32, #tpu.memory_space<vmem>>, vector<256x64xf32>
    tpu.vector_store %arg7[%c0_6, %c0_7], %8 {strides = array<i32>} : memref<256x64xf32, #tpu.memory_space<vmem>>, vector<256x64xf32>,
    %c0_i32_8 = arith.constant 0 : i32
    %10 = arith.cmpi eq, %arg2, %c0_i32_8 : i32
    %11 = arith.extui %10 : i1 to i32
    %c0_i32_9 = arith.constant 0 : i32
    %12 = arith.cmpi ne, %11, %c0_i32_9 : i32
    scf.if %12 {
      %c0_10 = arith.constant 0 : index
      %c0_11 = arith.constant 0 : index
      %13 = vector.load %arg7[%c0_10, %c0_11] : memref<256x64xf32, #tpu.memory_space<vmem>>, vector<256x64xf32>
      %c0_12 = arith.constant 0 : index
      %c0_13 = arith.constant 0 : index
      %14 = vector.load %arg5[%c0_12, %c0_13] : memref<1x64xf32, #tpu.memory_space<vmem>>, vector<1x64xf32>
      %15 = vector.broadcast %14 : vector<1x64xf32> to vector<256x64xf32>
      %16 = arith.addf %13, %15 : vector<256x64xf32>
      %17 = arith.truncf %16 : vector<256x64xf32> to vector<256x64xbf16>
      %c0_14 = arith.constant 0 : index
      %c0_15 = arith.constant 0 : index
      %18 = vector.load %arg6[%c0_14, %c0_15] : memref<256x64xbf16, #tpu.memory_space<vmem>>, vector<256x64xbf16>
      tpu.vector_store %arg6[%c0_14, %c0_15], %17 {strides = array<i32>} : memref<256x64xbf16, #tpu.memory_space<vmem>>, vector<256x64xbf16>,
    } else {
    }
    return
  }
  func.func @transform_0(%arg0: i32, %arg1: i32, %arg2: i32) -> (i32, i32) {
    %c0_i32 = arith.constant 0 : i32
    return %arg0, %arg2 : i32, i32
  }
  func.func @transform_1(%arg0: i32, %arg1: i32, %arg2: i32) -> (i32, i32) {
    %c0_i32 = arith.constant 0 : i32
    return %arg2, %arg1 : i32, i32
  }
  func.func @transform_2(%arg0: i32, %arg1: i32, %arg2: i32) -> (i32, i32) {
    %c0_i32 = arith.constant 0 : i32
    %c0_i32_0 = arith.constant 0 : i32
    return %c0_i32, %arg1 : i32, i32
  }
  func.func @transform_3(%arg0: i32, %arg1: i32, %arg2: i32) -> (i32, i32) {
    %c0_i32 = arith.constant 0 : i32
    return %arg0, %arg1 : i32, i32
  }
}

</mosaic_0001>

<bundles_post_ra>
// kernel: tpu_custom_call.1
= control target key start
LH: loop header
LB: loop body
LE: loop exit
PB: predicated region body
PF: predicated region fallthrough
CT: control target
= control target key end

     0   :  { %vm19_vm0 = vcmask 523264   ;;  %v835_v1 = vmov 0.0   ;;  %vm640_vm1 = vcmask 519168   ;;  %s1209_s1 = inlined_call_operand.vmem [shape: bf16[64,64], index: 1, kind: input, shape index: {}]   ;;  %s1210_s0 = inlined_call_operand.vmem [shape: f32[256,64], index: 0, kind: input, shape index: {}]   ;;  %s1211_s2 = inlined_call_operand.vmem [shape: f32[1,64], index: 2, kind: input, shape index: {}]   ;;  %s1212_s3 = inlined_call_operand.vmem [shape: bf16[256,64], index: 3, kind: output, shape index: {}]  }
   0x1   :  { %v831_v0 = vld [vmem:[%s1209_s1] sm:$0xff]   ;;  %22 = vst.msk [vmem:[#allocation2 + $0x10] sm:$0xff] %vm19_vm0, %v835_v1  ;;  %20 = vst.msk [vmem:[#allocation2] sm:$0xff] %vm19_vm0, %v835_v1  ;;  %v832_v2 = vld [vmem:[%s1209_s1 + $0x8] sm:$0xff]  }
   0x2   :  { %21 = vst.msk [vmem:[#allocation2 + $0x8] sm:$0xff] %vm19_vm0, %v835_v1  ;;  %23 = vst.msk [vmem:[#allocation2 + $0x18] sm:$0xff] %vm19_vm0, %v835_v1  ;;  %782 = vmatprep.subr.bf16.mxu0 %v831_v0  ;;  %822 = vmatprep.subr.bf16.mxu1 %v831_v0  ;;  %v833_v3 = vld [vmem:[%s1209_s1 + $0x10] sm:$0xff]   ;;  %v84_v4 = vld [vmem:[%s1210_s0] sm:$0xff] }
   0x3   :  { %24 = vst.msk [vmem:[#allocation2 + $0x20] sm:$0xff] %vm19_vm0, %v835_v1  ;;  %25 = vst.msk [vmem:[#allocation2 + $0x28] sm:$0xff] %vm19_vm0, %v835_v1  ;;  %783 = vmatpush3.bf16.msra.mxu0 %v831_v0  ;;  %826 = vmatpush3.bf16.msra.mxu1 %v831_v0  ;;  %v85_v5 = vld [vmem:[%s1210_s0 + $0x8] sm:$0xff]  ;;  %v100_v6 = vld [vmem:[%s1210_s0 + $0x80] sm:$0xff] }
   0x4   :  { %26 = vst.msk [vmem:[#allocation2 + $0x30] sm:$0xff] %vm19_vm0, %v835_v1  ;;  %27 = vst.msk [vmem:[#allocation2 + $0x38] sm:$0xff] %vm19_vm0, %v835_v1  ;;  %784 = vmatprep.subr.bf16.mxu0 %v832_v2  ;;  %823 = vmatprep.subr.bf16.mxu1 %v832_v2  ;;  %v116_v7 = vpack.c.bf16 %v85_v5, %v84_v4  ;;  %v101_v8 = vld [vmem:[%s1210_s0 + $0x88] sm:$0xff]  ;;  %v834_v10 = vld [vmem:[%s1209_s1 + $0x18] sm:$0xff]  }
   0x5   :  { %28 = vst.msk [vmem:[#allocation2 + $0x40] sm:$0xff] %vm19_vm0, %v835_v1  ;;  %29 = vst.msk [vmem:[#allocation2 + $0x48] sm:$0xff] %vm19_vm0, %v835_v1  ;;  %v124_v9 = vpack.c.bf16 %v101_v8, %v100_v6  ;;  %v86_v11 = vld [vmem:[%s1210_s0 + $0x10] sm:$0xff]  ;;  %v87_v12 = vld [vmem:[%s1210_s0 + $0x18] sm:$0xff] }
   0x6   :  { %30 = vst.msk [vmem:[#allocation2 + $0x50] sm:$0xff] %vm19_vm0, %v835_v1  ;;  %31 = vst.msk [vmem:[#allocation2 + $0x58] sm:$0xff] %vm19_vm0, %v835_v1  ;;  %790 = vmatprep.mubr.msk.bf16.mxu0 %vm19_vm0, %v116_v7  ;;  %v102_v13 = vld [vmem:[%s1210_s0 + $0x90] sm:$0xff]  ;;  %v103_v14 = vld [vmem:[%s1210_s0 + $0x98] sm:$0xff]  ;;  %v117_v19 = vpack.c.bf16 %v87_v12, %v86_v11 }
   0x7   :  { %32 = vst.msk [vmem:[#allocation2 + $0x60] sm:$0xff] %vm19_vm0, %v835_v1  ;;  %33 = vst.msk [vmem:[#allocation2 + $0x68] sm:$0xff] %vm19_vm0, %v835_v1  ;;  %785 = vmatpush3.bf16.msra.mxu0 %v832_v2  ;;  %827 = vmatpush3.bf16.msra.mxu1 %v832_v2  ;;  %v88_v15 = vld [vmem:[%s1210_s0 + $0x20] sm:$0xff]  ;;  %v89_v16 = vld [vmem:[%s1210_s0 + $0x28] sm:$0xff]  ;;  %v125_v20 = vpack.c.bf16 %v103_v14, %v102_v13 }
   0x8   :  { %34 = vst.msk [vmem:[#allocation2 + $0x70] sm:$0xff] %vm19_vm0, %v835_v1  ;;  %35 = vst.msk [vmem:[#allocation2 + $0x78] sm:$0xff] %vm19_vm0, %v835_v1  ;;  %786 = vmatprep.subr.bf16.mxu0 %v833_v3  ;;  %824 = vmatprep.subr.bf16.mxu1 %v833_v3  ;;  %v104_v17 = vld [vmem:[%s1210_s0 + $0xa0] sm:$0xff]  ;;  %v105_v18 = vld [vmem:[%s1210_s0 + $0xa8] sm:$0xff]  ;;  %v118_v21 = vpack.c.bf16 %v89_v16, %v88_v15 }
   0x9   :  { %36 = vst.msk [vmem:[#allocation2 + $0x80] sm:$0xff] %vm19_vm0, %v835_v1  ;;  %37 = vst.msk [vmem:[#allocation2 + $0x88] sm:$0xff] %vm19_vm0, %v835_v1  ;;  %806 = vmatprep.mubr.msk.bf16.mxu1 %vm19_vm0, %v124_v9  ;;  %v126_v22 = vpack.c.bf16 %v105_v18, %v104_v17  ;;  %v90_v23 = vld [vmem:[%s1210_s0 + $0x30] sm:$0xff]  ;;  %v91_v24 = vld [vmem:[%s1210_s0 + $0x38] sm:$0xff] }
   0xa   :  { %38 = vst.msk [vmem:[#allocation2 + $0x90] sm:$0xff] %vm19_vm0, %v835_v1  ;;  %39 = vst.msk [vmem:[#allocation2 + $0x98] sm:$0xff] %vm19_vm0, %v835_v1  ;;  %v106_v25 = vld [vmem:[%s1210_s0 + $0xb0] sm:$0xff]  ;;  %v107_v26 = vld [vmem:[%s1210_s0 + $0xb8] sm:$0xff]  ;;  %v119_v31 = vpack.c.bf16 %v91_v24, %v90_v23 }
   0xb   :  { %40 = vst.msk [vmem:[#allocation2 + $0xa0] sm:$0xff] %vm19_vm0, %v835_v1  ;;  %41 = vst.msk [vmem:[#allocation2 + $0xa8] sm:$0xff] %vm19_vm0, %v835_v1  ;;  %787 = vmatpush3.bf16.msra.mxu0 %v833_v3  ;;  %828 = vmatpush3.bf16.msra.mxu1 %v833_v3  ;;  %v92_v27 = vld [vmem:[%s1210_s0 + $0x40] sm:$0xff]  ;;  %v93_v28 = vld [vmem:[%s1210_s0 + $0x48] sm:$0xff]  ;;  %v127_v32 = vpack.c.bf16 %v107_v26, %v106_v25 }
   0xc   :  { %42 = vst.msk [vmem:[#allocation2 + $0xb0] sm:$0xff] %vm19_vm0, %v835_v1  ;;  %43 = vst.msk [vmem:[#allocation2 + $0xb8] sm:$0xff] %vm19_vm0, %v835_v1  ;;  %788 = vmatprep.subr.bf16.mxu0 %v834_v10  ;;  %825 = vmatprep.subr.bf16.mxu1 %v834_v10  ;;  %v108_v29 = vld [vmem:[%s1210_s0 + $0xc0] sm:$0xff]  ;;  %v109_v30 = vld [vmem:[%s1210_s0 + $0xc8] sm:$0xff]  ;;  %v120_v33 = vpack.c.bf16 %v93_v28, %v92_v27 }
   0xd   :  { %44 = vst.msk [vmem:[#allocation2 + $0xc0] sm:$0xff] %vm19_vm0, %v835_v1  ;;  %45 = vst.msk [vmem:[#allocation2 + $0xc8] sm:$0xff] %vm19_vm0, %v835_v1  ;;  %v128_v34 = vpack.c.bf16 %v109_v30, %v108_v29  ;;  %v94_v35 = vld [vmem:[%s1210_s0 + $0x50] sm:$0xff]  ;;  %v95_v36 = vld [vmem:[%s1210_s0 + $0x58] sm:$0xff] }
   0xe   :  { %46 = vst.msk [vmem:[#allocation2 + $0xd0] sm:$0xff] %vm19_vm0, %v835_v1  ;;  %47 = vst.msk [vmem:[#allocation2 + $0xd8] sm:$0xff] %vm19_vm0, %v835_v1  ;;  %v110_v37 = vld [vmem:[%s1210_s0 + $0xd0] sm:$0xff]  ;;  %v111_v38 = vld [vmem:[%s1210_s0 + $0xd8] sm:$0xff]  ;;  %v121_v43 = vpack.c.bf16 %v95_v36, %v94_v35 }
   0xf   :  { %48 = vst.msk [vmem:[#allocation2 + $0xe0] sm:$0xff] %vm19_vm0, %v835_v1  ;;  %49 = vst.msk [vmem:[#allocation2 + $0xe8] sm:$0xff] %vm19_vm0, %v835_v1  ;;  %789 = vmatpush3.bf16.msra.mxu0 %v834_v10  ;;  %829 = vmatpush3.bf16.msra.mxu1 %v834_v10  ;;  %v96_v39 = vld [vmem:[%s1210_s0 + $0x60] sm:$0xff]  ;;  %v97_v40 = vld [vmem:[%s1210_s0 + $0x68] sm:$0xff]  ;;  %v129_v44 = vpack.c.bf16 %v111_v38, %v110_v37 }
  0x10   :  { %50 = vst.msk [vmem:[#allocation2 + $0xf0] sm:$0xff] %vm19_vm0, %v835_v1  ;;  %51 = vst.msk [vmem:[#allocation2 + $0xf8] sm:$0xff] %vm19_vm0, %v835_v1  ;;  %v112_v41 = vld [vmem:[%s1210_s0 + $0xe0] sm:$0xff]  ;;  %v113_v42 = vld [vmem:[%s1210_s0 + $0xe8] sm:$0xff]  ;;  %v122_v45 = vpack.c.bf16 %v97_v40, %v96_v39 }
  0x11   :  { %v130_v46 = vpack.c.bf16 %v113_v42, %v112_v41  ;;  %v98_v47 = vld [vmem:[%s1210_s0 + $0x70] sm:$0xff]  ;;  %v99_v48 = vld [vmem:[%s1210_s0 + $0x78] sm:$0xff]  ;;  %v52_v55 = vld [vmem:[#allocation2] sm:$0xff] }
  0x12   :  { %791 = vmatmul.mubr.msk.bf16.vlgmr.msra.gmra.mrb[0].mxu0 %vm19_vm0, %v117_v19  ;;  %807 = vmatmul.mubr.msk.bf16.vlgmr.msra.gmra.mrb[0].mxu1 %vm19_vm0, %v125_v20  ;;  %v114_v49 = vld [vmem:[%s1210_s0 + $0xf0] sm:$0xff]  ;;  %v115_v50 = vld [vmem:[%s1210_s0 + $0xf8] sm:$0xff]  ;;  %v123_v51 = vpack.c.bf16 %v99_v48, %v98_v47  ;;  %v68_v56 = vld [vmem:[#allocation2 + $0x80] sm:$0xff] }
  0x13   :  { %794 = vmatprep.mubr.msk.bf16.mxu0 %vm19_vm0, %v118_v21  ;;  %810 = vmatprep.mubr.msk.bf16.mxu1 %vm19_vm0, %v126_v22  ;;  %v131_v52 = vpack.c.bf16 %v115_v50, %v114_v49  ;;  %v54_v53 = vld [vmem:[#allocation2 + $0x10] sm:$0xff]  ;;  %v55_v59 = vld [vmem:[#allocation2 + $0x18] sm:$0xff]  ;;  %v53_v1 = vld [vmem:[#allocation2 + $0x8] sm:$0xff] }
  0x14   :  { %v70_v54 = vld [vmem:[#allocation2 + $0x90] sm:$0xff]  ;;  %v71_v60 = vld [vmem:[#allocation2 + $0x98] sm:$0xff]  ;;  %v69_v2 = vld [vmem:[#allocation2 + $0x88] sm:$0xff] }
  0x15   :  { %v58_v13 = vld [vmem:[#allocation2 + $0x30] sm:$0xff]  ;;  %v56_v15 = vld [vmem:[#allocation2 + $0x20] sm:$0xff]  ;;  %v59_v20 = vld [vmem:[#allocation2 + $0x38] sm:$0xff] }
  0x16   :  { %v74_v14 = vld [vmem:[#allocation2 + $0xb0] sm:$0xff]  ;;  %v72_v16 = vld [vmem:[#allocation2 + $0xa0] sm:$0xff]  ;;  %v75_v21 = vld [vmem:[#allocation2 + $0xb8] sm:$0xff] }
  0x17   :  { %v1023_v17 = vld [vmem:[%s1211_s2] ss:$0 sm:$0xff]  ;;  %v57_v26 = vld [vmem:[#allocation2 + $0x28] sm:$0xff] }
  0x18   :  { %v73_v27 = vld [vmem:[#allocation2 + $0xa8] sm:$0xff] }
  0x1a   :  { %795 = vmatmul.mubr.msk.bf16.gmra.mrb[4].mxu0 %vm19_vm0, %v119_v31  ;;  %811 = vmatmul.mubr.msk.bf16.gmra.mrb[4].mxu1 %vm19_vm0, %v127_v32 }
  0x1b   :  { %798 = vmatprep.mubr.msk.bf16.mxu0 %vm19_vm0, %v120_v33  ;;  %814 = vmatprep.mubr.msk.bf16.mxu1 %vm19_vm0, %v128_v34 }
  0x22   :  { %799 = vmatmul.mubr.msk.bf16.gmra.mrb[8].mxu0 %vm19_vm0, %v121_v43  ;;  %815 = vmatmul.mubr.msk.bf16.gmra.mrb[8].mxu1 %vm19_vm0, %v129_v44 }
  0x23   :  { %802 = vmatprep.mubr.msk.bf16.mxu0 %vm19_vm0, %v122_v45  ;;  %818 = vmatprep.mubr.msk.bf16.mxu1 %vm19_vm0, %v130_v46 }
  0x2a   :  { %803 = vmatmul.mubr.msk.bf16.gmra.mrb[12].mxu0 %vm19_vm0, %v123_v51  ;;  %819 = vmatmul.mubr.msk.bf16.gmra.mrb[12].mxu1 %vm19_vm0, %v131_v52 }
  0xe5   :  { %v792_v57 = vpop.f32.mrb[0].mxu0  ;;  %v808_v58 = vpop.f32.mrb[0].mxu1 }
  0xe6   :  { %v376_v61 = vadd.f32 %v792_v57, %v54_v53  ;;  %v392_v62 = vadd.f32 %v808_v58, %v70_v54  ;;  %v247_v63 = vpop.f32.mrb[1].mxu0  ;;  %v311_v0 = vpop.f32.mrb[1].mxu1  ;;  %v62_v58 = vld [vmem:[#allocation2 + $0x50] sm:$0xff] }
  0xe7   :  { %v374_v3 = vadd.f32 %v247_v63, %v52_v55  ;;  %v390_v4 = vadd.f32 %v311_v0, %v68_v56  ;;  %v793_v5 = vpop.f32.mrb[2].mxu0  ;;  %v809_v6 = vpop.f32.mrb[2].mxu1  ;;  %v76_v63 = vld [vmem:[#allocation2 + $0xc0] sm:$0xff] }
  0xe8   :  { %408 = vst.msk [vmem:[#allocation2 + $0x10] sm:$0xff] %vm19_vm0, %v376_v61  ;;  %424 = vst.msk [vmem:[#allocation2 + $0x90] sm:$0xff] %vm19_vm0, %v392_v62  ;;  %v377_v7 = vadd.f32 %v793_v5, %v55_v59  ;;  %v393_v8 = vadd.f32 %v809_v6, %v71_v60  ;;  %v250_v9 = vpop.f32.mrb[3].mxu0  ;;  %v314_v10 = vpop.f32.mrb[3].mxu1  ;;  %v78_v59 = vld [vmem:[#allocation2 + $0xd0] sm:$0xff]  ;;  %v60_v62 = vld [vmem:[#allocation2 + $0x40] sm:$0xff] }
  0xe9   :  { %406 = vst.msk [vmem:[#allocation2] sm:$0xff] %vm19_vm0, %v374_v3  ;;  %422 = vst.msk [vmem:[#allocation2 + $0x80] sm:$0xff] %vm19_vm0, %v390_v4  ;;  %v375_v11 = vadd.f32 %v250_v9, %v53_v1  ;;  %v391_v12 = vadd.f32 %v314_v10, %v69_v2  ;;  %v63_v4 = vld [vmem:[#allocation2 + $0x58] sm:$0xff]  ;;  %v61_v10 = vld [vmem:[#allocation2 + $0x48] sm:$0xff] }
  0xea   :  { %409 = vst.msk [vmem:[#allocation2 + $0x18] sm:$0xff] %vm19_vm0, %v377_v7  ;;  %425 = vst.msk [vmem:[#allocation2 + $0x98] sm:$0xff] %vm19_vm0, %v393_v8  ;;  %v79_v5 = vld [vmem:[#allocation2 + $0xd8] sm:$0xff] }
  0xeb   :  { %407 = vst.msk [vmem:[#allocation2 + $0x8] sm:$0xff] %vm19_vm0, %v375_v11  ;;  %423 = vst.msk [vmem:[#allocation2 + $0x88] sm:$0xff] %vm19_vm0, %v391_v12  ;;  %v77_v11 = vld [vmem:[#allocation2 + $0xc8] sm:$0xff] }
  0xed   :  { %v796_v18 = vpop.f32.mrb[4].mxu0  ;;  %v812_v19 = vpop.f32.mrb[4].mxu1 }
  0xee   :  { %v380_v22 = vadd.f32 %v796_v18, %v58_v13  ;;  %v396_v23 = vadd.f32 %v812_v19, %v74_v14  ;;  %v263_v24 = vpop.f32.mrb[5].mxu0  ;;  %v327_v25 = vpop.f32.mrb[5].mxu1 }
  0xef   :  { %v443_v28 = vld [vmem:[#allocation2 + $0x10] sm:$0xff]  ;;  %v378_v30 = vadd.f32 %v263_v24, %v56_v15  ;;  %v394_v31 = vadd.f32 %v327_v25, %v72_v16  ;;  %v797_v32 = vpop.f32.mrb[6].mxu0  ;;  %v813_v33 = vpop.f32.mrb[6].mxu1 }
  0xf0   :  { %v459_v29 = vld [vmem:[#allocation2 + $0x90] sm:$0xff]  ;;  %v482_v34 = vadd.f32 %v1023_v17, %v443_v28  ;;  %v441_v36 = vld [vmem:[#allocation2] sm:$0xff]  ;;  %412 = vst.msk [vmem:[#allocation2 + $0x30] sm:$0xff] %vm19_vm0, %v380_v22  ;;  %428 = vst.msk [vmem:[#allocation2 + $0xb0] sm:$0xff] %vm19_vm0, %v396_v23  ;;  %v381_v38 = vadd.f32 %v797_v32, %v59_v20  ;;  %v397_v39 = vadd.f32 %v813_v33, %v75_v21  ;;  %v266_v40 = vpop.f32.mrb[7].mxu0  ;;  %v330_v41 = vpop.f32.mrb[7].mxu1 }
  0xf1   :  { %v498_v35 = vadd.f32 %v1023_v17, %v459_v29  ;;  %v457_v37 = vld [vmem:[#allocation2 + $0x80] sm:$0xff]  ;;  %v480_v42 = vadd.f32 %v1023_v17, %v441_v36  ;;  %v444_v44 = vld [vmem:[#allocation2 + $0x18] sm:$0xff]  ;;  %410 = vst.msk [vmem:[#allocation2 + $0x20] sm:$0xff] %vm19_vm0, %v378_v30  ;;  %426 = vst.msk [vmem:[#allocation2 + $0xa0] sm:$0xff] %vm19_vm0, %v394_v31  ;;  %v379_v46 = vadd.f32 %v266_v40, %v57_v26 }
  0xf2   :  { %v496_v43 = vadd.f32 %v1023_v17, %v457_v37  ;;  %v460_v45 = vld [vmem:[#allocation2 + $0x98] sm:$0xff]  ;;  %v395_v47 = vadd.f32 %v330_v41, %v73_v27  ;;  %v732_v48 = vpack.c.bf16 %v482_v34, %v482_v34  ;;  %v483_v50 = vadd.f32 %v1023_v17, %v444_v44  ;;  %v442_v52 = vld [vmem:[#allocation2 + $0x8] sm:$0xff]  ;;  %413 = vst.msk [vmem:[#allocation2 + $0x38] sm:$0xff] %vm19_vm0, %v381_v38  ;;  %v82_v44 = vld [vmem:[#allocation2 + $0xf0] sm:$0xff] }
  0xf3   :  { %v748_v49 = vpack.c.bf16 %v498_v35, %v498_v35  ;;  %v499_v51 = vadd.f32 %v1023_v17, %v460_v45  ;;  %v458_v53 = vld [vmem:[#allocation2 + $0x88] sm:$0xff]  ;;  %429 = vst.msk [vmem:[#allocation2 + $0xb8] sm:$0xff] %vm19_vm0, %v397_v39  ;;  %v730_v54 = vpack.c.bf16 %v480_v42, %v480_v42  ;;  %v481_v56 = vadd.f32 %v1023_v17, %v442_v52 }
  0xf4   :  { %v746_v55 = vpack.c.bf16 %v496_v43, %v496_v43  ;;  %v497_v57 = vadd.f32 %v1023_v17, %v458_v53  ;;  %411 = vst.msk [vmem:[#allocation2 + $0x28] sm:$0xff] %vm19_vm0, %v379_v46  ;;  %427 = vst.msk [vmem:[#allocation2 + $0xa8] sm:$0xff] %vm19_vm0, %v395_v47  ;;  %v733_v60 = vpack.c.bf16 %v483_v50, %v483_v50  ;;  %v66_v43 = vld [vmem:[#allocation2 + $0x70] sm:$0xff]  ;;  %v64_v47 = vld [vmem:[#allocation2 + $0x60] sm:$0xff] }
  0xf5   :  { %643 = vst.msk [vmem:[%s1212_s3 + $0x8] sm:$0xf] %vm640_vm1, %v732_v48  ;;  %659 = vst.msk [vmem:[%s1212_s3 + $0x48] sm:$0xf] %vm640_vm1, %v748_v49  ;;  %v749_v61 = vpack.c.bf16 %v499_v51, %v499_v51  ;;  %v731_v0 = vpack.c.bf16 %v481_v56, %v481_v56  ;;  %v800_v2 = vpop.f32.mrb[8].mxu0  ;;  %v816_v3 = vpop.f32.mrb[8].mxu1 }
  0xf6   :  { %641 = vst.msk [vmem:[%s1212_s3] sm:$0xf] %vm640_vm1, %v730_v54  ;;  %657 = vst.msk [vmem:[%s1212_s3 + $0x40] sm:$0xf] %vm640_vm1, %v746_v55  ;;  %v747_v1 = vpack.c.bf16 %v497_v57, %v497_v57  ;;  %v384_v6 = vadd.f32 %v800_v2, %v62_v58  ;;  %v400_v7 = vadd.f32 %v816_v3, %v78_v59  ;;  %v279_v8 = vpop.f32.mrb[9].mxu0  ;;  %v343_v9 = vpop.f32.mrb[9].mxu1 }
  0xf7   :  { %644 = vst.msk [vmem:[%s1212_s3 + $0xc] sm:$0xf] %vm640_vm1, %v733_v60  ;;  %660 = vst.msk [vmem:[%s1212_s3 + $0x4c] sm:$0xf] %vm640_vm1, %v749_v61  ;;  %v447_v12 = vld [vmem:[#allocation2 + $0x30] sm:$0xff]  ;;  %v382_v14 = vadd.f32 %v279_v8, %v60_v62  ;;  %v398_v15 = vadd.f32 %v343_v9, %v76_v63  ;;  %v801_v16 = vpop.f32.mrb[10].mxu0 }
  0xf8   :  { %642 = vst.msk [vmem:[%s1212_s3 + $0x4] sm:$0xf] %vm640_vm1, %v731_v0  ;;  %658 = vst.msk [vmem:[%s1212_s3 + $0x44] sm:$0xf] %vm640_vm1, %v747_v1  ;;  %v463_v13 = vld [vmem:[#allocation2 + $0xb0] sm:$0xff]  ;;  %v817_v18 = vpop.f32.mrb[10].mxu1  ;;  %v486_v19 = vadd.f32 %v1023_v17, %v447_v12  ;;  %v385_v23 = vadd.f32 %v801_v16, %v63_v4 }
  0xf9   :  { %v502_v20 = vadd.f32 %v1023_v17, %v463_v13  ;;  %v445_v21 = vld [vmem:[#allocation2 + $0x20] sm:$0xff]  ;;  %416 = vst.msk [vmem:[#allocation2 + $0x50] sm:$0xff] %vm19_vm0, %v384_v6  ;;  %432 = vst.msk [vmem:[#allocation2 + $0xd0] sm:$0xff] %vm19_vm0, %v400_v7  ;;  %v401_v24 = vadd.f32 %v817_v18, %v79_v5  ;;  %v282_v25 = vpop.f32.mrb[11].mxu0  ;;  %v346_v26 = vpop.f32.mrb[11].mxu1  ;;  %v448_v29 = vld [vmem:[#allocation2 + $0x38] sm:$0xff] }
  0xfa   :  { %v461_v22 = vld [vmem:[#allocation2 + $0xa0] sm:$0xff]  ;;  %v484_v27 = vadd.f32 %v1023_v17, %v445_v21  ;;  %v464_v30 = vld [vmem:[#allocation2 + $0xb8] sm:$0xff]  ;;  %414 = vst.msk [vmem:[#allocation2 + $0x40] sm:$0xff] %vm19_vm0, %v382_v14  ;;  %430 = vst.msk [vmem:[#allocation2 + $0xc0] sm:$0xff] %vm19_vm0, %v398_v15  ;;  %v383_v31 = vadd.f32 %v282_v25, %v61_v10  ;;  %v399_v32 = vadd.f32 %v346_v26, %v77_v11 }
  0xfb   :  { %v500_v28 = vadd.f32 %v1023_v17, %v461_v22  ;;  %v736_v33 = vpack.c.bf16 %v486_v19, %v486_v19  ;;  %v752_v34 = vpack.c.bf16 %v502_v20, %v502_v20  ;;  %v487_v35 = vadd.f32 %v1023_v17, %v448_v29  ;;  %v446_v37 = vld [vmem:[#allocation2 + $0x28] sm:$0xff]  ;;  %417 = vst.msk [vmem:[#allocation2 + $0x58] sm:$0xff] %vm19_vm0, %v385_v23  ;;  %v80_v48 = vld [vmem:[#allocation2 + $0xe0] sm:$0xff]  ;;  %v67_v53 = vld [vmem:[#allocation2 + $0x78] sm:$0xff] }
  0xfc   :  { %v503_v36 = vadd.f32 %v1023_v17, %v464_v30  ;;  %v462_v38 = vld [vmem:[#allocation2 + $0xa8] sm:$0xff]  ;;  %433 = vst.msk [vmem:[#allocation2 + $0xd8] sm:$0xff] %vm19_vm0, %v401_v24  ;;  %v734_v39 = vpack.c.bf16 %v484_v27, %v484_v27  ;;  %v485_v41 = vadd.f32 %v1023_v17, %v446_v37  ;;  %415 = vst.msk [vmem:[#allocation2 + $0x48] sm:$0xff] %vm19_vm0, %v383_v31  ;;  %v83_v54 = vld [vmem:[#allocation2 + $0xf8] sm:$0xff] }
  0xfd   :  { %v750_v40 = vpack.c.bf16 %v500_v28, %v500_v28  ;;  %v501_v42 = vadd.f32 %v1023_v17, %v462_v38  ;;  %431 = vst.msk [vmem:[#allocation2 + $0xc8] sm:$0xff] %vm19_vm0, %v399_v32  ;;  %v737_v45 = vpack.c.bf16 %v487_v35, %v487_v35  ;;  %v804_v51 = vpop.f32.mrb[12].mxu0  ;;  %v820_v52 = vpop.f32.mrb[12].mxu1  ;;  %v65_v59 = vld [vmem:[#allocation2 + $0x68] sm:$0xff] }
  0xfe   :  { %647 = vst.msk [vmem:[%s1212_s3 + $0x18] sm:$0xf] %vm640_vm1, %v736_v33  ;;  %663 = vst.msk [vmem:[%s1212_s3 + $0x58] sm:$0xf] %vm640_vm1, %v752_v34  ;;  %v753_v46 = vpack.c.bf16 %v503_v36, %v503_v36  ;;  %v735_v49 = vpack.c.bf16 %v485_v41, %v485_v41  ;;  %v388_v55 = vadd.f32 %v804_v51, %v66_v43  ;;  %v295_v57 = vpop.f32.mrb[13].mxu0  ;;  %v359_v58 = vpop.f32.mrb[13].mxu1 }
  0xff   :  { %645 = vst.msk [vmem:[%s1212_s3 + $0x10] sm:$0xf] %vm640_vm1, %v734_v39  ;;  %661 = vst.msk [vmem:[%s1212_s3 + $0x50] sm:$0xf] %vm640_vm1, %v750_v40  ;;  %v751_v50 = vpack.c.bf16 %v501_v42, %v501_v42  ;;  %v404_v56 = vadd.f32 %v820_v52, %v82_v44  ;;  %v81_v60 = vld [vmem:[#allocation2 + $0xe8] sm:$0xff]  ;;  %v386_v63 = vadd.f32 %v295_v57, %v64_v47  ;;  %v805_v1 = vpop.f32.mrb[14].mxu0 }
 0x100   :  { %648 = vst.msk [vmem:[%s1212_s3 + $0x1c] sm:$0xf] %vm640_vm1, %v737_v45  ;;  %664 = vst.msk [vmem:[%s1212_s3 + $0x5c] sm:$0xf] %vm640_vm1, %v753_v46  ;;  %v451_v61 = vld [vmem:[#allocation2 + $0x50] sm:$0xff]  ;;  %v402_v0 = vadd.f32 %v359_v58, %v80_v48  ;;  %v821_v2 = vpop.f32.mrb[14].mxu1  ;;  %v389_v7 = vadd.f32 %v805_v1, %v67_v53 }
 0x101   :  { %646 = vst.msk [vmem:[%s1212_s3 + $0x14] sm:$0xf] %vm640_vm1, %v735_v49  ;;  %662 = vst.msk [vmem:[%s1212_s3 + $0x54] sm:$0xf] %vm640_vm1, %v751_v50  ;;  %v467_v62 = vld [vmem:[#allocation2 + $0xd0] sm:$0xff]  ;;  %v490_v3 = vadd.f32 %v1023_v17, %v451_v61  ;;  %v449_v5 = vld [vmem:[#allocation2 + $0x40] sm:$0xff]  ;;  %v405_v8 = vadd.f32 %v821_v2, %v83_v54 }
 0x102   :  { %v506_v4 = vadd.f32 %v1023_v17, %v467_v62  ;;  %v465_v6 = vld [vmem:[#allocation2 + $0xc0] sm:$0xff]  ;;  %420 = vst.msk [vmem:[#allocation2 + $0x70] sm:$0xff] %vm19_vm0, %v388_v55  ;;  %436 = vst.msk [vmem:[#allocation2 + $0xf0] sm:$0xff] %vm19_vm0, %v404_v56  ;;  %v298_v9 = vpop.f32.mrb[15].mxu0  ;;  %v362_v10 = vpop.f32.mrb[15].mxu1  ;;  %v488_v11 = vadd.f32 %v1023_v17, %v449_v5  ;;  %v452_v13 = vld [vmem:[#allocation2 + $0x58] sm:$0xff] }
 0x103   :  { %v504_v12 = vadd.f32 %v1023_v17, %v465_v6  ;;  %v468_v14 = vld [vmem:[#allocation2 + $0xd8] sm:$0xff]  ;;  %418 = vst.msk [vmem:[#allocation2 + $0x60] sm:$0xff] %vm19_vm0, %v386_v63  ;;  %434 = vst.msk [vmem:[#allocation2 + $0xe0] sm:$0xff] %vm19_vm0, %v402_v0  ;;  %v387_v15 = vadd.f32 %v298_v9, %v65_v59  ;;  %v403_v16 = vadd.f32 %v362_v10, %v81_v60  ;;  %v450_v22 = vld [vmem:[#allocation2 + $0x48] sm:$0xff] }
 0x104   :  { %v740_v18 = vpack.c.bf16 %v490_v3, %v490_v3  ;;  %v756_v19 = vpack.c.bf16 %v506_v4, %v506_v4  ;;  %v491_v20 = vadd.f32 %v1023_v17, %v452_v13  ;;  %v507_v21 = vadd.f32 %v1023_v17, %v468_v14  ;;  %v466_v23 = vld [vmem:[#allocation2 + $0xc8] sm:$0xff]  ;;  %421 = vst.msk [vmem:[#allocation2 + $0x78] sm:$0xff] %vm19_vm0, %v389_v7 }
 0x105   :  { %437 = vst.msk [vmem:[#allocation2 + $0xf8] sm:$0xff] %vm19_vm0, %v405_v8  ;;  %v738_v24 = vpack.c.bf16 %v488_v11, %v488_v11  ;;  %v754_v25 = vpack.c.bf16 %v504_v12, %v504_v12  ;;  %v489_v26 = vadd.f32 %v1023_v17, %v450_v22  ;;  %v505_v27 = vadd.f32 %v1023_v17, %v466_v23 }
 0x106   :  { %419 = vst.msk [vmem:[#allocation2 + $0x68] sm:$0xff] %vm19_vm0, %v387_v15  ;;  %435 = vst.msk [vmem:[#allocation2 + $0xe8] sm:$0xff] %vm19_vm0, %v403_v16  ;;  %v741_v28 = vpack.c.bf16 %v491_v20, %v491_v20  ;;  %v757_v29 = vpack.c.bf16 %v507_v21, %v507_v21 }
 0x107   :  { %651 = vst.msk [vmem:[%s1212_s3 + $0x28] sm:$0xf] %vm640_vm1, %v740_v18  ;;  %667 = vst.msk [vmem:[%s1212_s3 + $0x68] sm:$0xf] %vm640_vm1, %v756_v19  ;;  %v739_v30 = vpack.c.bf16 %v489_v26, %v489_v26  ;;  %v755_v31 = vpack.c.bf16 %v505_v27, %v505_v27 }
 0x108   :  { %649 = vst.msk [vmem:[%s1212_s3 + $0x20] sm:$0xf] %vm640_vm1, %v738_v24  ;;  %665 = vst.msk [vmem:[%s1212_s3 + $0x60] sm:$0xf] %vm640_vm1, %v754_v25 }
 0x109   :  { %652 = vst.msk [vmem:[%s1212_s3 + $0x2c] sm:$0xf] %vm640_vm1, %v741_v28  ;;  %668 = vst.msk [vmem:[%s1212_s3 + $0x6c] sm:$0xf] %vm640_vm1, %v757_v29  ;;  %v455_v32 = vld [vmem:[#allocation2 + $0x70] sm:$0xff] }
 0x10a   :  { %650 = vst.msk [vmem:[%s1212_s3 + $0x24] sm:$0xf] %vm640_vm1, %v739_v30  ;;  %666 = vst.msk [vmem:[%s1212_s3 + $0x64] sm:$0xf] %vm640_vm1, %v755_v31  ;;  %v471_v33 = vld [vmem:[#allocation2 + $0xf0] sm:$0xff]  ;;  %v494_v34 = vadd.f32 %v1023_v17, %v455_v32  ;;  %v453_v36 = vld [vmem:[#allocation2 + $0x60] sm:$0xff] }
 0x10b   :  { %v510_v35 = vadd.f32 %v1023_v17, %v471_v33  ;;  %v469_v37 = vld [vmem:[#allocation2 + $0xe0] sm:$0xff]  ;;  %v492_v38 = vadd.f32 %v1023_v17, %v453_v36  ;;  %v456_v40 = vld [vmem:[#allocation2 + $0x78] sm:$0xff] }
 0x10c   :  { %v508_v39 = vadd.f32 %v1023_v17, %v469_v37  ;;  %v472_v41 = vld [vmem:[#allocation2 + $0xf8] sm:$0xff]  ;;  %v744_v42 = vpack.c.bf16 %v494_v34, %v494_v34  ;;  %v495_v44 = vadd.f32 %v1023_v17, %v456_v40 }
 0x10d   :  { %v760_v43 = vpack.c.bf16 %v510_v35, %v510_v35  ;;  %v511_v45 = vadd.f32 %v1023_v17, %v472_v41  ;;  %v454_v46 = vld [vmem:[#allocation2 + $0x68] sm:$0xff]  ;;  %v742_v48 = vpack.c.bf16 %v492_v38, %v492_v38 }
 0x10e   :  { %v470_v47 = vld [vmem:[#allocation2 + $0xe8] sm:$0xff]  ;;  %v758_v49 = vpack.c.bf16 %v508_v39, %v508_v39  ;;  %v493_v50 = vadd.f32 %v1023_v17, %v454_v46  ;;  %655 = vst.msk [vmem:[%s1212_s3 + $0x38] sm:$0xf] %vm640_vm1, %v744_v42  ;;  %v745_v52 = vpack.c.bf16 %v495_v44, %v495_v44 }
 0x10f   :  { %v509_v51 = vadd.f32 %v1023_v17, %v470_v47  ;;  %671 = vst.msk [vmem:[%s1212_s3 + $0x78] sm:$0xf] %vm640_vm1, %v760_v43  ;;  %v761_v53 = vpack.c.bf16 %v511_v45, %v511_v45  ;;  %653 = vst.msk [vmem:[%s1212_s3 + $0x30] sm:$0xf] %vm640_vm1, %v742_v48 }
 0x110   :  { %669 = vst.msk [vmem:[%s1212_s3 + $0x70] sm:$0xf] %vm640_vm1, %v758_v49  ;;  %v743_v17 = vpack.c.bf16 %v493_v50, %v493_v50  ;;  %656 = vst.msk [vmem:[%s1212_s3 + $0x3c] sm:$0xf] %vm640_vm1, %v745_v52 }
 0x111   :  { %v759_v54 = vpack.c.bf16 %v509_v51, %v509_v51  ;;  %672 = vst.msk [vmem:[%s1212_s3 + $0x7c] sm:$0xf] %vm640_vm1, %v761_v53 }
 0x112   :  { %654 = vst.msk [vmem:[%s1212_s3 + $0x34] sm:$0xf] %vm640_vm1, %v743_v17 }
 0x113   :  { %670 = vst.msk [vmem:[%s1212_s3 + $0x74] sm:$0xf] %vm640_vm1, %v759_v54 }

</bundles_post_ra>
